<compile_context>
chip_gen: v7x
topology: tpu7x:2x2x1
jax: 0.10.0
libtpu: 0.0.40
codegen_flags: <defaults>
</compile_context>

<pallas_src>
import functools
import re

import jax
import jax.numpy as jnp
from jax.experimental import pallas as pl
from jax.experimental.pallas import tpu as pltpu

LN_EPS = 1e-5  # PyTorch nn.LayerNorm default
_F32 = jnp.float32
_BF16 = jnp.bfloat16


def _layernorm(x, g, b):
  mu = jnp.mean(x, axis=-1, keepdims=True)
  var = jnp.mean((x - mu) ** 2, axis=-1, keepdims=True)
  return (x - mu) * jax.lax.rsqrt(var + LN_EPS) * g + b


def _gelu_tanh(x):
  # tanh-approximation GELU: the tanh goes to the EUP slot (free alongside the
  # MXU). |err| vs torch.nn.GELU()'s exact erf form is < 1e-3.
  c = 0.7978845608028654  # sqrt(2/pi)
  return 0.5 * x * (1.0 + jnp.tanh(c * (x + 0.044715 * x * x * x)))


def _tpu_generation():
  try:
    kind = jax.devices()[0].device_kind.lower()
  except Exception:
    return 6
  m = re.search(r"(\d+)", kind)
  return int(m.group(1)) if m else 6


def _pick_tile(n, preferred):
  for t in (preferred, 256, 128):
    if t <= n and n % t == 0:
      return t
  return n


def _rep_spec(shape):
  zeros = (0,) * len(shape)
  return pl.BlockSpec(shape, lambda b, s, _z=zeros: _z)


# --------------------------- Pallas kernels ---------------------------
def kv_proj_kernel(x_ref, ln1_g_ref, ln1_b_ref, wk_ref, wv_ref, kt_ref, vt_ref):
  """LayerNorm + K^T/V^T projection for one (batch, seq-tile) grid step.

  x_ref: (TN, D) f32 residual rows.  Outputs bf16 (inner, TN) slabs so the
  attention kernel can head-split with a free leading-axis reshape.
  """
  xn = _layernorm(x_ref[...].astype(_F32),
                  ln1_g_ref[...], ln1_b_ref[...]).astype(_BF16)   # (TN, D)
  nt = (((1,), (1,)), ((), ()))                                   # contract D
  kt_ref[...] = jax.lax.dot_general(
      wk_ref[...], xn, nt, preferred_element_type=_F32).astype(kt_ref.dtype)
  vt_ref[...] = jax.lax.dot_general(
      wv_ref[...], xn, nt, preferred_element_type=_F32).astype(vt_ref.dtype)


def attn_ffn_kernel(xq_ref, kt_ref, vt_ref, ln1_g_ref, ln1_b_ref, wq_ref,
                    wout_ref, bout_ref, ln2_g_ref, ln2_b_ref,
                    w1_ref, b1_ref, w2_ref, b2_ref, o_ref, *, heads, dim_head):
  """Fused attention + MLP block for one (batch, query-tile) grid step.

  xq_ref: (TQ, D) f32 residual rows owned by this step.
  kt_ref/vt_ref: (inner, N) bf16, already LayerNorm'ed + projected (stage 1).
  The softmax scale is pre-folded into Wq.
  """
  xq = xq_ref[...].astype(_F32)                       # (TQ, D)
  tq = xq.shape[0]
  dh = dim_head
  inner = heads * dh
  n_kv = kt_ref.shape[1]

  # ---------------- Residual(PreNorm(Attention)) ----------------
  xq_n = _layernorm(xq, ln1_g_ref[...], ln1_b_ref[...]).astype(_BF16)
  # Q: one full-MXU-width matmul, then a single head split.
  q = jnp.dot(xq_n, wq_ref[...], preferred_element_type=_F32)     # (TQ, inner)
  q3 = jnp.transpose(q.reshape(tq, heads, dh), (1, 0, 2)).astype(_BF16)
  # Head split of K^T / V^T is a free leading-axis reshape.
  k3 = kt_ref[...].reshape(heads, dh, n_kv)                       # (H, dh, N)
  v3 = vt_ref[...].reshape(heads, dh, n_kv)                       # (H, dh, N)

  dots = jnp.einsum("hqd,hdk->hqk", q3, k3,
                    preferred_element_type=_F32)                  # (H, TQ, N)
  dots = dots - jnp.max(dots, axis=-1, keepdims=True)
  e = jnp.exp(dots)                                               # f32
  # Deferred softmax normalization: scale the (H, dh, TQ) AV result, not the
  # (H, TQ, N) score matrix.
  r = pl.reciprocal(jnp.sum(e, axis=-1), approx=True)             # (H, TQ)
  out_t = jnp.einsum("hdk,hqk->hdq", v3, e.astype(_BF16),
                     preferred_element_type=_F32)                 # (H, dh, TQ)
  out_t = out_t * r[:, None, :]
  # Head merge is a free (H, dh, TQ) -> (inner, TQ) reshape; one dot_general
  # contracting dim 0 against Wout replaces per-head transposes + concat.
  out_flat = out_t.reshape(inner, tq).astype(_BF16)
  attn_out = jax.lax.dot_general(
      out_flat, wout_ref[...], (((0,), (0,)), ((), ())),
      preferred_element_type=_F32) + bout_ref[...]                # (TQ, D)
  x = xq + attn_out                                               # residual

  # ---------------- Residual(PreNorm(FeedForward)) ----------------
  xn2 = _layernorm(x, ln2_g_ref[...], ln2_b_ref[...]).astype(_BF16)
  h1 = jnp.dot(xn2, w1_ref[...], preferred_element_type=_F32) + b1_ref[...]
  h1 = _gelu_tanh(h1)
  ff = jnp.dot(h1.astype(_BF16), w2_ref[...],
               preferred_element_type=_F32) + b2_ref[...]
  o_ref[...] = (x + ff).astype(o_ref.dtype)


# --------------------------- layer wrapper ---------------------------
def transformer_layer(x, p, *, heads, dim_head, q_tile, vmem_limit):
  """Apply one transformer block: stage-1 KV projection + stage-2 fused block."""
  B, N, D = x.shape
  inner = heads * dim_head
  mlp_dim = p["w1"].shape[1]
  tq = _pick_tile(N, q_tile)

  # Stage 1: LayerNorm + K/V projection, once per sequence (not per query tile).
  kt, vt = pl.pallas_call(
      kv_proj_kernel,
      out_shape=(jax.ShapeDtypeStruct((B, inner, N), _BF16),
                 jax.ShapeDtypeStruct((B, inner, N), _BF16)),
      grid=(B, N // tq),
      in_specs=[
          pl.BlockSpec((None, tq, D), lambda b, s: (b, s, 0)),  # x seq tile
          _rep_spec((1, D)),                                    # ln1 gamma
          _rep_spec((1, D)),                                    # ln1 beta
          _rep_spec((inner, D)),                                # Wk^T
          _rep_spec((inner, D)),                                # Wv^T
      ],
      out_specs=(pl.BlockSpec((None, inner, tq), lambda b, s: (b, 0, s)),
                 pl.BlockSpec((None, inner, tq), lambda b, s: (b, 0, s))),
      compiler_params=pltpu.CompilerParams(
          dimension_semantics=("parallel", "parallel"),
          vmem_limit_bytes=vmem_limit),
  )(x, p["ln1_g"], p["ln1_b"], p["wk_t"], p["wv_t"])

  # Stage 2: fused attention + MLP over query-row tiles.  All weight specs are
  # grid-invariant (constant index maps), so Pallas does not re-DMA them across
  # steps.  (On v7x, pipeline_mode=pl.Buffered(1) on these specs would further
  # halve their VMEM footprint.)
  kernel = functools.partial(attn_ffn_kernel, heads=heads, dim_head=dim_head)
  return pl.pallas_call(
      kernel,
      out_shape=jax.ShapeDtypeStruct((B, N, D), x.dtype),
      grid=(B, N // tq),
      in_specs=[
          pl.BlockSpec((None, tq, D), lambda b, s: (b, s, 0)),     # x query tile
          pl.BlockSpec((None, inner, N), lambda b, s: (b, 0, 0)),  # K^T (bf16)
          pl.BlockSpec((None, inner, N), lambda b, s: (b, 0, 0)),  # V^T (bf16)
          _rep_spec((1, D)),                 # ln1 gamma
          _rep_spec((1, D)),                 # ln1 beta
          _rep_spec((D, inner)),             # Wq (scale folded)
          _rep_spec((inner, D)),             # Wout
          _rep_spec((1, D)),                 # bout
          _rep_spec((1, D)),                 # ln2 gamma
          _rep_spec((1, D)),                 # ln2 beta
          _rep_spec((D, mlp_dim)),           # W1
          _rep_spec((1, mlp_dim)),           # b1
          _rep_spec((mlp_dim, D)),           # W2
          _rep_spec((1, D)),                 # b2
      ],
      out_specs=pl.BlockSpec((None, tq, D), lambda b, s: (b, s, 0)),
      compiler_params=pltpu.CompilerParams(
          dimension_semantics=("parallel", "parallel"),
          vmem_limit_bytes=vmem_limit),
  )(x, kt, vt, p["ln1_g"], p["ln1_b"], p["wq"], p["wout"], p["bout"],
    p["ln2_g"], p["ln2_b"], p["w1"], p["b1"], p["w2"], p["b2"])


# ------------------- one-time parameter preparation -------------------
def prepare_layer_params(p, *, heads, dim_head):
  """Re-lay-out one layer's weights into kernel form (done ONCE, not per call)."""
  inner = heads * dim_head
  scale = float(dim_head) ** -0.5
  wq = p["wqkv"][:, :inner] * scale          # fold softmax scale into Wq
  wk = p["wqkv"][:, inner:2 * inner]
  wv = p["wqkv"][:, 2 * inner:]
  return dict(
      ln1_g=p["ln1_g"], ln1_b=p["ln1_b"],
      wq=wq.astype(_BF16),                   # (D, inner)
      wk_t=wk.T.astype(_BF16),               # (inner, D)
      wv_t=wv.T.astype(_BF16),               # (inner, D)
      wout=p["wout"].astype(_BF16), bout=p["bout"],
      ln2_g=p["ln2_g"], ln2_b=p["ln2_b"],
      w1=p["w1"].astype(_BF16), b1=p["b1"],
      w2=p["w2"].astype(_BF16), b2=p["b2"],
  )


def prepare_params(params, *, heads, dim_head):
  return dict(
      embedding=params["embedding"],
      pos_embedding=params["pos_embedding"],
      layers=[prepare_layer_params(l, heads=heads, dim_head=dim_head)
              for l in params["layers"]])


# ------------------------------ forward ------------------------------
def vit_forward(token_ids, prepared, *, heads, dim_head):
  """ViT.forward(x, compute_codebook=False), eval mode (dropout = identity)."""
  gen = _tpu_generation()
  # 256-row query tiles on v6e (128 MiB VMEM); 128 on v5e and on v7x (64 MiB).
  q_tile = 256 if gen == 6 else 128
  vmem_limit = (40 if gen >= 7 else 64) * 1024 * 1024
  n = token_ids.shape[1]
  x = jnp.take(prepared["embedding"], token_ids, axis=0)          # (B, N, D)
  # pos_embedding is (1, 1, dim) exactly as in the PyTorch module.
  x = x + prepared["pos_embedding"][:, :n]
  # emb_dropout / dropout: p=0.0 / eval -> identity
  for layer in prepared["layers"]:
    x = transformer_layer(x, layer, heads=heads, dim_head=dim_head,
                          q_tile=q_tile, vmem_limit=vmem_limit)
  return x


# ----------------------- parameter initialization -----------------------
def init_params(key, *, vocab_size, dim, depth, heads, dim_head, mlp_dim,
                pad_token_id=0):
  inner = heads * dim_head
  keys = jax.random.split(key, 2 + depth)
  embedding = 0.02 * jax.random.normal(keys[0], (vocab_size, dim), jnp.float32)
  embedding = embedding.at[pad_token_id].set(0.0)   # nn.Embedding padding_idx
  pos = 0.02 * jax.random.normal(keys[1], (1, 1, dim), jnp.float32)
  layers = []
  for l in range(depth):
    lk = jax.random.split(keys[2 + l], 5)
    layers.append(dict(
        ln1_g=jnp.ones((1, dim), jnp.float32),
        ln1_b=jnp.zeros((1, dim), jnp.float32),
        wqkv=0.02 * jax.random.normal(lk[0], (dim, 3 * inner), jnp.float32),
        wout=0.02 * jax.random.normal(lk[1], (inner, dim), jnp.float32),
        bout=0.02 * jax.random.normal(lk[2], (1, dim), jnp.float32),
        ln2_g=jnp.ones((1, dim), jnp.float32),
        ln2_b=jnp.zeros((1, dim), jnp.float32),
        w1=0.02 * jax.random.normal(lk[3], (dim, mlp_dim), jnp.float32),
        b1=jnp.zeros((1, mlp_dim), jnp.float32),
        w2=0.02 * jax.random.normal(lk[4], (mlp_dim, dim), jnp.float32),
        b2=jnp.zeros((1, dim), jnp.float32),
    ))
  return dict(embedding=embedding, pos_embedding=pos, layers=layers)


# --------------- pure-JAX f32 reference (for checking) ---------------
def _layer_ref(x, p, heads, dim_head):
  def ln(y, g, b):
    mu = y.mean(-1, keepdims=True)
    var = ((y - mu) ** 2).mean(-1, keepdims=True)
    return (y - mu) / jnp.sqrt(var + LN_EPS) * g + b

  B, N, D = x.shape
  inner = heads * dim_head
  xn = ln(x, p["ln1_g"], p["ln1_b"])
  qkv = xn @ p["wqkv"]
  q, k, v = jnp.split(qkv, 3, axis=-1)
  to_heads = lambda t: t.reshape(B, N, heads, dim_head).transpose(0, 2, 1, 3)
  q, k, v = map(to_heads, (q, k, v))
  dots = jnp.einsum("bhid,bhjd->bhij", q, k) * float(dim_head) ** -0.5
  attn = jax.nn.softmax(dots, axis=-1)
  o = jnp.einsum("bhij,bhjd->bhid", attn, v).transpose(0, 2, 1, 3).reshape(B, N, inner)
  x = x + (o @ p["wout"] + p["bout"])
  xn2 = ln(x, p["ln2_g"], p["ln2_b"])
  h = jax.nn.gelu(xn2 @ p["w1"] + p["b1"], approximate=False)
  return x + (h @ p["w2"] + p["b2"])


def vit_reference(token_ids, params, *, heads, dim_head):
  n = token_ids.shape[1]
  x = jnp.take(params["embedding"], token_ids, axis=0)
  x = x + params["pos_embedding"][:, :n]
  for layer in params["layers"]:
    x = _layer_ref(x, layer, heads, dim_head)
  return x


if __name__ == "__main__":
  # Small shapes consistent with the module's forward.
  B, N = 2, 8
  dim, depth, heads, dim_head, mlp_dim = 32, 2, 4, 8, 64
  vocab_size = 16
  pad_token_id, cls_token_id = 0, 1

  key = jax.random.PRNGKey(0)
  pkey, tkey = jax.random.split(key)
  params = init_params(pkey, vocab_size=vocab_size, dim=dim, depth=depth,
                       heads=heads, dim_head=dim_head, mlp_dim=mlp_dim,
                       pad_token_id=pad_token_id)
  # One-time kernel-layout weight preparation (hoisted out of the forward pass).
  kparams = jax.block_until_ready(
      prepare_params(params, heads=heads, dim_head=dim_head))

  # Token-id input (compute_codebook=False path); force a CLS token in col 0.
  token_ids = jax.random.randint(tkey, (B, N), 0, vocab_size, dtype=jnp.int32)
  token_ids = token_ids.at[:, 0].set(cls_token_id)

  out = vit_forward(token_ids, kparams, heads=heads, dim_head=dim_head)
  out = jax.block_until_ready(out)

  ref = vit_reference(token_ids, params, heads=heads, dim_head=dim_head)
  assert out.shape == (B, N, dim), out.shape
  # bf16 matmul operands + approx reciprocal + tanh-GELU vs the f32/erf
  # reference -> relaxed (but still bug-catching) tolerance.
  max_err = float(jnp.max(jnp.abs(out - ref)))
  assert max_err < 2e-2, f"mismatch vs reference: {max_err}"
  print("KERNEL_OK")
</pallas_src>

<mosaic_0001>
module attributes {stable_mosaic.version = 11 : i64} {
  func.func @kv_proj_kernel(%arg0: i32, %arg1: i32, %arg2: memref<1x8x32xf32, #tpu.memory_space<vmem>>, %arg3: memref<1x32xf32, #tpu.memory_space<vmem>>, %arg4: memref<1x32xf32, #tpu.memory_space<vmem>>, %arg5: memref<32x32xbf16, #tpu.memory_space<vmem>>, %arg6: memref<32x32xbf16, #tpu.memory_space<vmem>>, %arg7: memref<1x32x8xbf16, #tpu.memory_space<vmem>>, %arg8: memref<1x32x8xbf16, #tpu.memory_space<vmem>>) attributes {dimension_semantics = [#tpu.dimension_semantics<parallel>, #tpu.dimension_semantics<parallel>], iteration_bounds = array<i64: 2, 1>, scalar_prefetch = 0 : i64, scratch_operands = 0 : i64, tpu.core_type = #tpu.core_type<tc>, window_params = [{transform_indices = @transform_0, window_bounds = array<i64: 1, 8, 32>}, {pipeline_mode = #tpu.pipeline_mode<synchronous>, transform_indices = @transform_1, window_bounds = array<i64: 1, 32>}, {pipeline_mode = #tpu.pipeline_mode<synchronous>, transform_indices = @transform_2, window_bounds = array<i64: 1, 32>}, {pipeline_mode = #tpu.pipeline_mode<synchronous>, transform_indices = @transform_3, window_bounds = array<i64: 32, 32>}, {pipeline_mode = #tpu.pipeline_mode<synchronous>, transform_indices = @transform_4, window_bounds = array<i64: 32, 32>}, {transform_indices = @transform_5, window_bounds = array<i64: 1, 32, 8>}, {transform_indices = @transform_6, window_bounds = array<i64: 1, 32, 8>}]} {
    %c0 = arith.constant 0 : index
    %c0_0 = arith.constant 0 : index
    %c0_1 = arith.constant 0 : index
    %0 = vector.load %arg2[%c0, %c0_0, %c0_1] : memref<1x8x32xf32, #tpu.memory_space<vmem>>, vector<1x8x32xf32>
    %1 = vector.shape_cast %0 : vector<1x8x32xf32> to vector<8x32xf32>
    %c0_2 = arith.constant 0 : index
    %c0_3 = arith.constant 0 : index
    %2 = vector.load %arg3[%c0_2, %c0_3] : memref<1x32xf32, #tpu.memory_space<vmem>>, vector<1x32xf32>
    %c0_4 = arith.constant 0 : index
    %c0_5 = arith.constant 0 : index
    %3 = vector.load %arg4[%c0_4, %c0_5] : memref<1x32xf32, #tpu.memory_space<vmem>>, vector<1x32xf32>
    %cst = arith.constant dense<0.000000e+00> : vector<8xf32>
    %4 = vector.multi_reduction <add>, %1, %cst [1] : vector<8x32xf32> to vector<8xf32>
    %5 = vector.shape_cast %4 : vector<8xf32> to vector<8x1xf32>
    %cst_6 = arith.constant 3.200000e+01 : f32
    %6 = vector.broadcast %cst_6 : f32 to vector<8x1xf32>
    %7 = arith.divf %5, %6 : vector<8x1xf32>
    %8 = vector.broadcast %7 : vector<8x1xf32> to vector<8x32xf32>
    %9 = arith.subf %1, %8 : vector<8x32xf32>
    %10 = arith.mulf %9, %9 : vector<8x32xf32>
    %cst_7 = arith.constant dense<0.000000e+00> : vector<8xf32>
    %11 = vector.multi_reduction <add>, %10, %cst_7 [1] : vector<8x32xf32> to vector<8xf32>
    %12 = vector.shape_cast %11 : vector<8xf32> to vector<8x1xf32>
    %cst_8 = arith.constant 3.200000e+01 : f32
    %13 = vector.broadcast %cst_8 : f32 to vector<8x1xf32>
    %14 = arith.divf %12, %13 : vector<8x1xf32>
    %15 = vector.broadcast %7 : vector<8x1xf32> to vector<8x32xf32>
    %16 = arith.subf %1, %15 : vector<8x32xf32>
    %cst_9 = arith.constant 9.99999974E-6 : f32
    %17 = vector.broadcast %cst_9 : f32 to vector<8x1xf32>
    %18 = arith.addf %14, %17 : vector<8x1xf32>
    %19 = math.rsqrt %18 : vector<8x1xf32>
    %20 = vector.broadcast %19 : vector<8x1xf32> to vector<8x32xf32>
    %21 = arith.mulf %16, %20 : vector<8x32xf32>
    %22 = vector.broadcast %2 : vector<1x32xf32> to vector<8x32xf32>
    %23 = arith.mulf %21, %22 : vector<8x32xf32>
    %24 = vector.broadcast %3 : vector<1x32xf32> to vector<8x32xf32>
    %25 = arith.addf %23, %24 : vector<8x32xf32>
    %26 = arith.truncf %25 : vector<8x32xf32> to vector<8x32xbf16>
    %c0_10 = arith.constant 0 : index
    %c0_11 = arith.constant 0 : index
    %27 = vector.load %arg5[%c0_10, %c0_11] : memref<32x32xbf16, #tpu.memory_space<vmem>>, vector<32x32xbf16>
    %cst_12 = arith.constant dense<0.000000e+00> : vector<32x8xf32>
    %28 = tpu.matmul %27, %26, %cst_12 {dimension_numbers = #tpu.dot_dimension_numbers<[1], [1], [0], [0], [0, 0, 1, 0], [], []>} : vector<32x32xbf16>, vector<8x32xbf16>, vector<32x8xf32> -> vector<32x8xf32>
    %29 = arith.truncf %28 : vector<32x8xf32> to vector<32x8xbf16>
    %c0_13 = arith.constant 0 : index
    %c0_14 = arith.constant 0 : index
    %c0_15 = arith.constant 0 : index
    %30 = vector.load %arg7[%c0_13, %c0_14, %c0_15] : memref<1x32x8xbf16, #tpu.memory_space<vmem>>, vector<1x32x8xbf16>
    %31 = vector.shape_cast %30 : vector<1x32x8xbf16> to vector<32x8xbf16>
    %32 = vector.shape_cast %29 : vector<32x8xbf16> to vector<1x32x8xbf16>
    tpu.vector_store %arg7[%c0_13, %c0_14, %c0_15], %32 {strides = array<i32>} : memref<1x32x8xbf16, #tpu.memory_space<vmem>>, vector<1x32x8xbf16>,
    %c0_16 = arith.constant 0 : index
    %c0_17 = arith.constant 0 : index
    %33 = vector.load %arg6[%c0_16, %c0_17] : memref<32x32xbf16, #tpu.memory_space<vmem>>, vector<32x32xbf16>
    %cst_18 = arith.constant dense<0.000000e+00> : vector<32x8xf32>
    %34 = tpu.matmul %33, %26, %cst_18 {dimension_numbers = #tpu.dot_dimension_numbers<[1], [1], [0], [0], [0, 0, 1, 0], [], []>} : vector<32x32xbf16>, vector<8x32xbf16>, vector<32x8xf32> -> vector<32x8xf32>
    %35 = arith.truncf %34 : vector<32x8xf32> to vector<32x8xbf16>
    %c0_19 = arith.constant 0 : index
    %c0_20 = arith.constant 0 : index
    %c0_21 = arith.constant 0 : index
    %36 = vector.load %arg8[%c0_19, %c0_20, %c0_21] : memref<1x32x8xbf16, #tpu.memory_space<vmem>>, vector<1x32x8xbf16>
    %37 = vector.shape_cast %36 : vector<1x32x8xbf16> to vector<32x8xbf16>
    %38 = vector.shape_cast %35 : vector<32x8xbf16> to vector<1x32x8xbf16>
    tpu.vector_store %arg8[%c0_19, %c0_20, %c0_21], %38 {strides = array<i32>} : memref<1x32x8xbf16, #tpu.memory_space<vmem>>, vector<1x32x8xbf16>,
    return
  }
  func.func @transform_0(%arg0: i32, %arg1: i32) -> (i32, i32, i32) {
    %c0_i32 = arith.constant 0 : i32
    %c0_i32_0 = arith.constant 0 : i32
    return %arg0, %arg1, %c0_i32 : i32, i32, i32
  }
  func.func @transform_1(%arg0: i32, %arg1: i32) -> (i32, i32) {
    %c0_i32 = arith.constant 0 : i32
    %c0_i32_0 = arith.constant 0 : i32
    %c0_i32_1 = arith.constant 0 : i32
    return %c0_i32, %c0_i32_0 : i32, i32
  }
  func.func @transform_2(%arg0: i32, %arg1: i32) -> (i32, i32) {
    %c0_i32 = arith.constant 0 : i32
    %c0_i32_0 = arith.constant 0 : i32
    %c0_i32_1 = arith.constant 0 : i32
    return %c0_i32, %c0_i32_0 : i32, i32
  }
  func.func @transform_3(%arg0: i32, %arg1: i32) -> (i32, i32) {
    %c0_i32 = arith.constant 0 : i32
    %c0_i32_0 = arith.constant 0 : i32
    %c0_i32_1 = arith.constant 0 : i32
    return %c0_i32, %c0_i32_0 : i32, i32
  }
  func.func @transform_4(%arg0: i32, %arg1: i32) -> (i32, i32) {
    %c0_i32 = arith.constant 0 : i32
    %c0_i32_0 = arith.constant 0 : i32
    %c0_i32_1 = arith.constant 0 : i32
    return %c0_i32, %c0_i32_0 : i32, i32
  }
  func.func @transform_5(%arg0: i32, %arg1: i32) -> (i32, i32, i32) {
    %c0_i32 = arith.constant 0 : i32
    %c0_i32_0 = arith.constant 0 : i32
    return %arg0, %c0_i32, %arg1 : i32, i32, i32
  }
  func.func @transform_6(%arg0: i32, %arg1: i32) -> (i32, i32, i32) {
    %c0_i32 = arith.constant 0 : i32
    %c0_i32_0 = arith.constant 0 : i32
    return %arg0, %c0_i32, %arg1 : i32, i32, i32
  }
}

</mosaic_0001>

<bundles_post_ra>
// kernel: tpu_custom_call.1
= control target key start
LH: loop header
LB: loop body
LE: loop exit
PB: predicated region body
PF: predicated region fallthrough
CT: control target
= control target key end

     0   :  { %s1629_s0 = inlined_call_operand.hbm [shape: f32[2,8,32], index: 0, kind: input, shape index: {}]   ;;  %s1630_s1 = inlined_call_operand.hbm [shape: f32[1,32], index: 1, kind: input, shape index: {}]   ;;  %s1631_s2 = inlined_call_operand.hbm [shape: f32[1,32], index: 2, kind: input, shape index: {}]   ;;  %s1632_s3 = inlined_call_operand.hbm [shape: bf16[32,32], index: 3, kind: input, shape index: {}]   ;;  %s1633_s4 = inlined_call_operand.hbm [shape: bf16[32,32], index: 4, kind: input, shape index: {}]   ;;  %s1634_s5 = inlined_call_operand.hbm [shape: bf16[2,32,8], index: 5, kind: output, shape index: {0}]   ;;  %s1635_s6 = inlined_call_operand.hbm [shape: bf16[2,32,8], index: 6, kind: output, shape index: {1}]  }
   0x1   :  { %1641 = sst [smem:[#allocation19_spill]] %s1630_s1 }
   0x2   :  { %12 = vsyncpa [#allocation3], 0 }
   0x3   :  { %14 = vsyncpa [#allocation3 + $0x1], 0 }
   0x4   :  { %15 = vsyncpa [#allocation6], 0 }
   0x5   :  { %16 = vsyncpa [#allocation9], 0 }
   0x6   :  { %17 = vsyncpa [#allocation4], 0 }
   0x7   :  { %19 = vsyncpa [#allocation4 + $0x1], 0 }
   0x8   :  { %20 = vsyncpa [#allocation13], 0 }
   0x9   :  { %22 = vsyncpa [#allocation13 + $0x1], 0  ;;  %s1264_s21 = smov 0   ;;  %s1266_s22 = smov 0  }
   0xa   :  { %s1268_s23 = smov 0   ;;  %s1270_s24 = smov 0  }
   0xb   :  { %s1272_s25 = smov 0   ;;  %s1274_s26 = smov 0  }
   0xc LB: > { %s1639_s27 = sadd.s32 4294967295, %s1216_s26   ;;  %p762_p0 = scmp.ge.s32.totalorder %s1216_s26, 1  ;;  %s1216_s26 = sphi %s1274_s26, %s28_s26   ;;  %s1212_s25 = sphi %s1272_s25, %s1663_s25   ;;  %s1208_s24 = sphi %s1270_s24, %s1662_s24   ;;  %s1204_s23 = sphi %s1268_s23, %s1661_s23   ;;  %s1200_s22 = sphi %s1266_s22, %s1660_s22   ;;  %s1196_s21 = sphi %s1264_s21, %s1659_s21  }
   0xd   : > { %p1298_p1 = scmp.eq.s32.totalorder %s1639_s27, 0  ;;  %p213_p2 = scmp.lt.s32.totalorder %s1216_s26, 3 }
   0xe   : > { %s1218_s30 = smov [#allocation5]   ;;  %s1219_s8 = smov [#allocation8]  }
   0xf   : > { %s1642_s28 = scalar_select %p1298_p1, 1, 0 }
  0x10   : > { %p1303_p3 = pnand %p762_p0, %p213_p2  ;;  %s226_s7 = sshll.u32 %s1218_s30, 4  ;;  %s227_s7 = int_to_ptr.vmem [resolvable:$true] %s226_s7 }
  0x11   : > { %s247_s9 = sshll.u32 %s1219_s8, 4  ;;  %s1220_s11 = smov [#allocation7]   ;;  %s1316_s9 = int_to_ptr.vmem [resolvable:$true] %s247_s9 }
  0x12   : > { %s1643_s29 = scalar_select %p1303_p3, 1, 0 }
  0x13   : > { %p856_p5 = pneg %p1303_p3  ;;  %s1318_s12 = sshll.u32 %s1220_s11, 4  ;;  %s238_s12 = int_to_ptr.vmem [resolvable:$true] %s1318_s12 }
  0x14   : > { %s1645_s1 = sld [smem:[#allocation19_spill]] }
  0x15   : > { %p1312_p6 = pnand %p856_p5, %p1298_p1 }
  0x17   : > { %p1328_p8 = pneg %p1312_p6 }
  0x1a   : > { %s952_s15 = scalar_lea.hbm %s1645_s1, 16 }
  0x1b   : > { %p953_p7 = scmp.ne.s32.totalorder %s1645_s1, %s952_s15  ;;  %p959_p11 = scmp.lt.u32.totalorder %s952_s15, %s1645_s1 }
  0x1d   : > { %p955_p9 = pnand %p1328_p8, %p953_p7 }
  0x1f   : > { %p956_p10 = pneg %p955_p9 }
  0x21   : > { %p961_p12 = pnand %p959_p11, %p956_p10 }
  0x23   : > { %964 = shalt.err (!%p961_p12)
}
  0x24   : > { %s965_s30 = scalar_lea.vmem %s227_s7, 16  ;;  %s972_s8 = scalar_lea.vmem %s227_s7, 32 }
  0x25   : > { %p966_p13 = scmp.ne.s32.totalorder %s227_s7, %s965_s30  ;;  %p973_p5 = scmp.lt.s32.totalorder %s227_s7, %s227_s7 }
  0x26   : > { %p974_p4 = scmp.lt.s32.totalorder %s972_s8, %s965_s30 }
  0x27   : > { %p968_p0 = pnand %p966_p13, %p1328_p8 }
  0x28   : > { %p975_p3 = por %p974_p4, %p973_p5 }
  0x29   : > { %p969_p2 = pneg %p968_p0 }
  0x2b   : > { %p976_p1 = pnand %p975_p3, %p969_p2 }
  0x2d   : > { %979 = shalt.err (!%p976_p1)
}
  0x2e   : > { %859 = dma.hbm_to_vmem [thread:$0]  (!%p1312_p6), %s1645_s1, 16, %s227_s7, [#allocation6]  }
  0x2f   : > { %s980_s16 = scalar_lea.hbm %s1632_s3, 256 }
  0x30   : > { %p981_p7 = scmp.ne.s32.totalorder %s1632_s3, %s980_s16  ;;  %p987_p1 = scmp.lt.u32.totalorder %s980_s16, %s1632_s3 }
  0x32   : > { %p983_p9 = pnand %p981_p7, %p1328_p8 }
  0x34   : > { %p984_p4 = pneg %p983_p9 }
  0x36   : > { %p989_p3 = pnand %p987_p1, %p984_p4 }
  0x38   : > { %992 = shalt.err (!%p989_p3)
}
  0x39   : > { %s993_s7 = scalar_lea.vmem %s1316_s9, 256  ;;  %p1001_p13 = scmp.lt.s32.totalorder %s1316_s9, %s1316_s9 }
  0x3a   : > { %p994_p10 = scmp.ne.s32.totalorder %s1316_s9, %s993_s7  ;;  %p1002_p0 = scmp.lt.s32.totalorder %s993_s7, %s993_s7 }
  0x3c   : > { %p996_p11 = pnand %p994_p10, %p1328_p8  ;;  %p1003_p2 = por %p1002_p0, %p1001_p13 }
  0x3e   : > { %p997_p12 = pneg %p996_p11 }
  0x40   : > { %p1004_p5 = pnand %p1003_p2, %p997_p12 }
  0x42   : > { %1007 = shalt.err (!%p1004_p5)
}
  0x43   : > { %s1221_s8 = smov 64   ;;  %s1222_s11 = smov 4  }
  0x44   : > { %865 = dma.hbm_to_vmem [thread:$0]  (!%p1312_p6), %s1632_s3, 256, %s1316_s9, [#allocation9], %s1221_s8, %s1221_s8, %s1222_s11  }
  0x45   : > { %s1008_s17 = scalar_lea.hbm %s1631_s2, 16 }
  0x46   : > { %p1009_p7 = scmp.ne.s32.totalorder %s1631_s2, %s1008_s17  ;;  %p1015_p1 = scmp.lt.u32.totalorder %s1008_s17, %s1631_s2 }
  0x48   : > { %p1011_p9 = pnand %p1009_p7, %p1328_p8 }
  0x4a   : > { %p1012_p4 = pneg %p1011_p9 }
  0x4c   : > { %p1017_p3 = pnand %p1015_p1, %p1012_p4 }
  0x4e   : > { %1020 = shalt.err (!%p1017_p3)
}
  0x4f   : > { %s1021_s13 = scalar_lea.vmem %s238_s12, 16  ;;  %s1028_s9 = scalar_lea.vmem %s238_s12, 32 }
  0x50   : > { %p1022_p10 = scmp.ne.s32.totalorder %s238_s12, %s1021_s13  ;;  %p1029_p13 = scmp.lt.s32.totalorder %s238_s12, %s238_s12 }
  0x51   : > { %p1030_p0 = scmp.lt.s32.totalorder %s1028_s9, %s1021_s13 }
  0x52   : > { %p1024_p11 = pnand %p1022_p10, %p1328_p8 }
  0x53   : > { %p1031_p2 = por %p1030_p0, %p1029_p13 }
  0x54   : > { %p1025_p12 = pneg %p1024_p11 }
  0x56   : > { %p1032_p5 = pnand %p1031_p2, %p1025_p12 }
  0x58   : > { %1035 = shalt.err (!%p1032_p5)
}
  0x59   : > { %862 = dma.hbm_to_vmem [thread:$0]  (!%p1312_p6), %s1631_s2, 16, %s238_s12, [#allocation6]  }
  0x5a   : > { %s1223_s16 = smov [#allocation10]   ;;  %s1036_s30 = scalar_lea.hbm %s1633_s4, 256 }
  0x5b   : > { %s260_s17 = sshll.u32 %s1223_s16, 4  ;;  %p1037_p7 = scmp.ne.s32.totalorder %s1633_s4, %s1036_s30  ;;  %s261_s17 = int_to_ptr.vmem [resolvable:$true] %s260_s17 }
  0x5c   : > { %p1043_p1 = scmp.lt.u32.totalorder %s1036_s30, %s1633_s4 }
  0x5d   : > { %p1039_p9 = pnand %p1037_p7, %p1328_p8 }
  0x5f   : > { %p1040_p4 = pneg %p1039_p9 }
  0x61   : > { %p1045_p3 = pnand %p1043_p1, %p1040_p4 }
  0x63   : > { %1048 = shalt.err (!%p1045_p3)
}
  0x64   : > { %s1049_s12 = scalar_lea.vmem %s261_s17, 256  ;;  %p1057_p13 = scmp.lt.s32.totalorder %s261_s17, %s261_s17 }
  0x65   : > { %p1050_p10 = scmp.ne.s32.totalorder %s261_s17, %s1049_s12  ;;  %p1058_p0 = scmp.lt.s32.totalorder %s1049_s12, %s1049_s12 }
  0x67   : > { %p1052_p11 = pnand %p1050_p10, %p1328_p8  ;;  %p1059_p2 = por %p1058_p0, %p1057_p13 }
  0x69   : > { %p1053_p12 = pneg %p1052_p11 }
  0x6b   : > { %p1060_p5 = pnand %p1059_p2, %p1053_p12 }
  0x6d   : > { %1063 = shalt.err (!%p1060_p5)
}
  0x6e   : > { %868 = dma.hbm_to_vmem [thread:$0]  (!%p1312_p6), %s1633_s4, 256, %s261_s17, [#allocation9], %s1221_s8, %s1221_s8, %s1222_s11  }
  0x6f   : > { %s761_s10 = sadd.s32 4294967294, %s1216_s26   ;;  %s40_s18 = sadd.s32 1, %s1212_s25 }
  0x70   : > { %p42_p8 = scmp.ge.s32.totalorder %s40_s18, 2  ;;  %s49_s15 = sadd.s32 1, %s1204_s23 }
  0x71   : > { %p56_p7 = scmp.ne.s32.totalorder %s1204_s23, %s1200_s22  ;;  %p57_p9 = scmp.eq.s32.totalorder %s1216_s26, 0 }
  0x72   : > { %s1665_s18 = smov (%p42_p8, %s40_s18), 0  ;;  %p62_p1 = scmp.ne.s32.totalorder %s1200_s22, %s1196_s21 }
  0x73   : > { %p1418_p4 = por %p57_p9, %p56_p7  ;;  %s44_s8 = ssub.s32 %s1212_s25, %s1665_s18 }
  0x74   : > { %s1648_s11 = sadd.s32 4294967295, %s1216_s26   ;;  %p47_p3 = scmp.eq.s32.totalorder %s44_s8, 0 }
  0x75   : > { %p172_p6 = scmp.eq.s32.totalorder %s1648_s11, 1  ;;  %p1649_p10 = scmp.ne.s32.totalorder %s1642_s28, 0 }
  0x76   : > { %p178_p13 = scmp.eq.s32.totalorder %s761_s10, 1  ;;  %p884_p2 = scmp.lt.s32.totalorder %s1216_s26, 2 }
  0x77   : > { %p1430_p11 = por %p1649_p10, %p62_p1  ;;  %p1434_p12 = por %p172_p6, %p56_p7 }
  0x78   : > { %s1439_s20 = scalar_select %p47_p3, %s1204_s23, %s49_s15  }
  0x79   : > { %s1651_s19 = scalar_select %p1434_p12, 1, 0 }
  0x7a   : > { %p1441_p0 = por %p178_p13, %p62_p1  ;;  %s274_s7 = sand.u32 1, %s1204_s23  }
  0x7b   : > { %s769_s13 = sshll.u32 %s1212_s25, 7  ;;  %s768_s9 = sshll.u32 %s274_s7, 3 }
  0x7c   : > { %s1652_s30 = scalar_select %p1441_p0, 1, 0 }
  0x7d   : > { %s1451_s14 = scalar_lea.hbm %s1629_s0, %s769_s13  ;;  %s278_s10 = scalar_lea.vmem [#allocation2], %s768_s9 }
  0x7e   : > { %s286_s15 = sshll.u32 %s278_s10, 4  ;;  %p1455_p5 = pnand %p884_p2, %p1418_p4  ;;  %s1459_s15 = int_to_ptr.vmem [resolvable:$true] %s286_s15 }
  0x7f   : > { %s275_s11 = scalar_lea.sflag [#allocation3], %s274_s7  ;;  %s1064_s1 = scalar_lea.hbm %s1451_s14, 128 }
  0x80   : > { %p1065_p8 = scmp.ne.s32.totalorder %s1451_s14, %s1064_s1  ;;  %p1066_p7 = pneg %p1455_p5 }
  0x81   : > { %s1069_s16 = scalar_lea.hbm %s1629_s0, 256  ;;  %p1070_p4 = scmp.lt.u32.totalorder %s1451_s14, %s1629_s0 }
  0x82   : > { %p1067_p9 = pnand %p1066_p7, %p1065_p8  ;;  %p1071_p6 = scmp.lt.u32.totalorder %s1069_s16, %s1064_s1 }
  0x83   : > { %p1073_p10 = scmp.lt.u32.totalorder %s1064_s1, %s1451_s14 }
  0x84   : > { %p1068_p1 = pneg %p1067_p9  ;;  %p1072_p3 = por %p1071_p6, %p1070_p4 }
  0x86   : > { %p1074_p13 = por %p1073_p10, %p1072_p3 }
  0x88   : > { %p1075_p2 = pnand %p1074_p13, %p1068_p1 }
  0x8a   : > { %1078 = shalt.err (!%p1075_p2)
}
  0x8b   : > { %s1079_s7 = scalar_lea.vmem %s1459_s15, 128  ;;  %s1224_s10 = smov [#allocation2]  }
  0x8c   : > { %p1080_p8 = scmp.ne.s32.totalorder %s1459_s15, %s1079_s7  ;;  %s1084_s13 = sshll.u32 %s1224_s10, 4  ;;  %s1085_s13 = int_to_ptr.vmem [resolvable:$false] %s1084_s13 }
  0x8d   : > { %s1086_s9 = scalar_lea.vmem %s1085_s13, 256  ;;  %p1087_p12 = scmp.lt.s32.totalorder %s1459_s15, %s1085_s13 }
  0x8e   : > { %p1082_p9 = pnand %p1080_p8, %p1066_p7  ;;  %p1088_p4 = scmp.lt.s32.totalorder %s1086_s9, %s1079_s7 }
  0x90   : > { %p1083_p0 = pneg %p1082_p9  ;;  %p1089_p6 = por %p1088_p4, %p1087_p12 }
  0x92   : > { %p1090_p3 = pnand %p1089_p6, %p1083_p0 }
  0x94   : > { %1093 = shalt.err (!%p1090_p3)
}
  0x95   : > { %872 = dma.hbm_to_vmem [thread:$0]  (!%p1455_p5), %s1451_s14, 128, %s1459_s15, %s275_s11  }
  0x96   : > { %p1654_p1 = scmp.ne.s32.totalorder %s1643_s29, 0 }
  0x97   : > { %s1489_s1 = sand.u32 (!%p1654_p1), 1, %s1200_s22  }
  0x98   : > { %295 = sbr.rel (%p1654_p1) target bundleno = 744 (0x2e8), region = 40  ;;  %s771_s16 = sshll.u32 (!%p1654_p1), %s1489_s1, 3 }
  0x99   : > { %s298_s12 = scalar_lea.sflag (!%p1654_p1), [#allocation3], %s1489_s1  ;;  %s301_s27 = scalar_lea.vmem (!%p1654_p1), [#allocation2], %s771_s16 }
  0x9f   : > { %1175 = dma.done.wait (%p1430_p11), %s298_s12, 128  }
  0xa0   : > { %1177 = vsyncadd (%p1430_p11), %s298_s12, 4294967168  ;;  %p1655_p12 = scmp.ne.s32.totalorder %s1642_s28, 0 }
  0xa2   : > { %1179 = dma.done.wait (%p1655_p12), [#allocation6], 32  }
  0xa3   : > { %1181 = vsyncadd (%p1655_p12), [#allocation6], 4294967264 }
  0xa4   : > { %1183 = dma.done.wait (%p1655_p12), [#allocation9], 512  }
  0xa5   : > { %1185 = vsyncadd (%p1655_p12), [#allocation9], 4294966784  ;;  %vm355_vm0 = vcmask 261120   ;;  %v352_v0 = vld [vmem:[%s301_s27] sm:$0xff]  ;;  %v946_v7 = vld [vmem:[#allocation8] sm:$0xff]   ;;  %s776_s28 = sshll.u32 %s1489_s1, 4 }
  0xa6   : > { %v356_v1 = vsel %vm355_vm0, %v352_v0, 0.0  ;;  %v947_v8 = vld [vmem:[#allocation10] sm:$0xff]   ;;  %822 = vmatprep.mubr.msk.bf16.mxu0 %vm355_vm0, %v946_v7  ;;  %v778_v13 = vld [vmem:[#allocation5] ss:$0 sm:$0xff]  ;;  %v779_v15 = vld [vmem:[#allocation7] ss:$0 sm:$0xff] }
  0xa7   : > { %357 = vadd.xlane.f32.xlu0 %v356_v1  ;;  %828 = vmatprep.mubr.msk.bf16.mxu1 %vm355_vm0, %v947_v8  ;;  %v948_v20 = vld [vmem:[#allocation8 + $0x8] sm:$0xff]   ;;  %v949_v21 = vld [vmem:[#allocation10 + $0x8] sm:$0xff]   ;;  %s1515_s29 = scalar_lea.vmem [#allocation11], %s776_s28  ;;  %s1518_s14 = scalar_lea.vmem [#allocation12], %s776_s28  ;;  %vm473_vm1 = vcmask 60416  }
  0xa8   : > { %s587_s17 = sshll.u32 %s1515_s29, 4  ;;  %s604_s15 = sshll.u32 %s1518_s14, 4  ;;  %s1522_s17 = int_to_ptr.vmem [resolvable:$true] %s587_s17  ;;  %s1524_s15 = int_to_ptr.vmem [resolvable:$true] %s604_s15 }
  0xa9   : > { %s812_s8 = sshll.u32 %s1208_s24, 8  ;;  %s568_s16 = scalar_lea.sflag [#allocation4], %s1489_s1 }
  0xaa   : > { %s1533_s7 = scalar_lea.hbm %s1634_s5, %s812_s8  ;;  %s1546_s9 = scalar_lea.hbm %s1635_s6, %s812_s8 }
  0xab   : > { %s1094_s12 = scalar_lea.vmem %s1522_s17, 256  ;;  %p1656_p0 = scmp.ne.s32.totalorder %s1651_s19, 0 }
  0xac   : > { %p1095_p11 = scmp.ne.s32.totalorder %s1522_s17, %s1094_s12  ;;  %s1225_s27 = smov [#allocation11]  }
  0xad   : > { %s1098_s28 = sshll.u32 %s1225_s27, 4  ;;  %s1099_s28 = int_to_ptr.vmem [resolvable:$false] %s1098_s28 }
  0xae   : > { %p1096_p5 = pnand %p1095_p11, %p1656_p0  ;;  %s1100_s24 = scalar_lea.vmem %s1099_s28, 512 }
  0xaf   : > { %p1101_p10 = scmp.lt.s32.totalorder %s1522_s17, %s1099_s28  ;;  %p1102_p13 = scmp.lt.s32.totalorder %s1100_s24, %s1094_s12 }
  0xb0   : > { %p1097_p7 = pneg %p1096_p5 }
  0xb1   : > { %p1103_p2 = por %p1102_p13, %p1101_p10 }
  0xb3   : > { %p1104_p8 = pnand %p1103_p2, %p1097_p7 }
 0x134   : > { %v358_v2 = vpop.xlane.xlu0 %357 }
 0x135   : > { %v360_v3 = vmul.f32 0.03125, %v358_v2 }
 0x137   : > { %v361_v4 = vsub.f32 %v352_v0, %v360_v3 }
 0x139   : > { %v362_v5 = vmul.f32 %v361_v4, %v361_v4 }
 0x13b   : > { %v363_v6 = vsel %vm355_vm0, %v362_v5, 0.0 }
 0x13c   : > { %364 = vadd.xlane.f32.xlu0 %v363_v6 }
 0x1c9   : > { %v365_v9 = vpop.xlane.xlu0 %364 }
 0x1ca   : > { %v366_v10 = vmul.f32 0.03125, %v365_v9 }
 0x1cc   : > { %v367_v11 = vadd.f32 1e-05, %v366_v10 }
 0x1ce   : > { %950 = vrsqrt.f32 %v367_v11 }
 0x1d8   : > { %v951_v12 = vpop.eup %950 }
 0x1d9   : > { %v369_v14 = vmul.f32 %v951_v12, %v361_v4 }
 0x1db   : > { %v376_v16 = vmul.f32 %v778_v13, %v369_v14 }
 0x1dd   : > { %v383_v17 = vadd.f32 %v779_v15, %v376_v16 }
 0x1df   : > { %v384_v18 = vpack.c.bf16 %v383_v17, %v383_v17 }
 0x1e1   : > { %832 = vmatprep.subr.msk.bf16.mxu0 %vm355_vm0, %v384_v18  ;;  %833 = vmatprep.subr.msk.bf16.mxu1 %vm355_vm0, %v384_v18  ;;  %v406_v19 = vsel %vm355_vm0, %v384_v18, 0 }
 0x1e2   : > { %821 = vmatpush3.bf16.xpose.msra.mxu0 %v406_v19  ;;  %827 = vmatpush3.bf16.xpose.msra.mxu1 %v406_v19 }
 0x1e9   : > { %823 = vmatmul.mubr.msk.bf16.vlgmr.msra.gmra.mrb[0].mxu0 %vm355_vm0, %v948_v20  ;;  %829 = vmatmul.mubr.msk.bf16.vlgmr.msra.gmra.mrb[0].mxu1 %vm355_vm0, %v949_v21 }
 0x2bc   : > { %v824_v22 = vpop.f32.mrb[0].mxu0  ;;  %v830_v23 = vpop.f32.mrb[0].mxu1 }
 0x2bd   : > { %v806_v24 = vpack.c.bf16 %v824_v22, %v824_v22  ;;  %v810_v25 = vpack.c.bf16 %v830_v23, %v830_v23  ;;  %v442_v26 = vpop.f32.mrb[1].mxu0  ;;  %v532_v27 = vpop.f32.mrb[1].mxu1 }
 0x2be   : > { %v804_v28 = vpack.c.bf16 %v442_v26, %v442_v26  ;;  %v808_v29 = vpack.c.bf16 %v532_v27, %v532_v27  ;;  %v825_v30 = vpop.f32.mrb[2].mxu0  ;;  %v831_v31 = vpop.f32.mrb[2].mxu1 }
 0x2bf   : > { %476 = vst.msk [vmem:[%s1515_s29 + $0x8] sm:$0xf] %vm473_vm1, %v806_v24  ;;  %565 = vst.msk [vmem:[%s1518_s14 + $0x8] sm:$0xf] %vm473_vm1, %v810_v25  ;;  %v807_v32 = vpack.c.bf16 %v825_v30, %v825_v30  ;;  %v811_v33 = vpack.c.bf16 %v831_v31, %v831_v31  ;;  %v445_v34 = vpop.f32.mrb[3].mxu0  ;;  %v535_v35 = vpop.f32.mrb[3].mxu1 }
 0x2c0   : > { %474 = vst.msk [vmem:[%s1515_s29] sm:$0xf] %vm473_vm1, %v804_v28  ;;  %563 = vst.msk [vmem:[%s1518_s14] sm:$0xf] %vm473_vm1, %v808_v29  ;;  %v805_v36 = vpack.c.bf16 %v445_v34, %v445_v34  ;;  %v809_v37 = vpack.c.bf16 %v535_v35, %v535_v35 }
 0x2c1   : > { %477 = vst.msk [vmem:[%s1515_s29 + $0xc] sm:$0xf] %vm473_vm1, %v807_v32  ;;  %566 = vst.msk [vmem:[%s1518_s14 + $0xc] sm:$0xf] %vm473_vm1, %v811_v33 }
 0x2c2   : > { %475 = vst.msk [vmem:[%s1515_s29 + $0x4] sm:$0xf] %vm473_vm1, %v805_v36  ;;  %564 = vst.msk [vmem:[%s1518_s14 + $0x4] sm:$0xf] %vm473_vm1, %v809_v37 }
 0x2c3   : > { %1107 = shalt.err (!%p1104_p8)
}
 0x2c4   : > { %s1108_s29 = scalar_lea.hbm %s1533_s7, 256  ;;  %s1112_s11 = scalar_lea.hbm %s1634_s5, 512 }
 0x2c5   : > { %p1109_p9 = scmp.ne.s32.totalorder %s1533_s7, %s1108_s29  ;;  %p1113_p3 = scmp.lt.u32.totalorder %s1533_s7, %s1634_s5 }
 0x2c6   : > { %p1114_p1 = scmp.lt.u32.totalorder %s1112_s11, %s1108_s29  ;;  %p1116_p11 = scmp.lt.u32.totalorder %s1108_s29, %s1533_s7 }
 0x2c7   : > { %p1110_p4 = pnand %p1109_p9, %p1656_p0 }
 0x2c8   : > { %p1115_p12 = por %p1114_p1, %p1113_p3 }
 0x2c9   : > { %p1111_p6 = pneg %p1110_p4 }
 0x2ca   : > { %p1117_p5 = por %p1116_p11, %p1115_p12 }
 0x2cc   : > { %p1118_p7 = pnand %p1117_p5, %p1111_p6 }
 0x2ce   : > { %1121 = shalt.err (!%p1118_p7)
}
 0x2cf   : > { %s1226_s12 = smov 64   ;;  %s1227_s27 = smov 4  }
 0x2d0   : > { %852 = dma.vmem_to_hbm [thread:$0]  (%p1656_p0), %s1522_s17, 256, %s1533_s7, %s568_s16, %s1226_s12, %s1226_s12, %s1227_s27  }
 0x2d1   : > { %s573_s28 = scalar_lea.sflag [#allocation13], %s1489_s1  ;;  %s1122_s24 = scalar_lea.vmem %s1524_s15, 256 }
 0x2d2   : > { %p1123_p10 = scmp.ne.s32.totalorder %s1524_s15, %s1122_s24  ;;  %s1228_s29 = smov [#allocation12]  }
 0x2d3   : > { %s1126_s14 = sshll.u32 %s1228_s29, 4  ;;  %s1127_s14 = int_to_ptr.vmem [resolvable:$false] %s1126_s14 }
 0x2d4   : > { %p1124_p13 = pnand %p1123_p10, %p1656_p0  ;;  %s1128_s8 = scalar_lea.vmem %s1127_s14, 512 }
 0x2d5   : > { %p1129_p8 = scmp.lt.s32.totalorder %s1524_s15, %s1127_s14  ;;  %p1130_p9 = scmp.lt.s32.totalorder %s1128_s8, %s1122_s24 }
 0x2d6   : > { %p1125_p2 = pneg %p1124_p13 }
 0x2d7   : > { %p1131_p4 = por %p1130_p9, %p1129_p8 }
 0x2d9   : > { %p1132_p6 = pnand %p1131_p4, %p1125_p2 }
 0x2db   : > { %1135 = shalt.err (!%p1132_p6)
}
 0x2dc   : > { %s1136_s17 = scalar_lea.hbm %s1546_s9, 256  ;;  %s1140_s11 = scalar_lea.hbm %s1635_s6, 512 }
 0x2dd   : > { %p1137_p3 = scmp.ne.s32.totalorder %s1546_s9, %s1136_s17  ;;  %p1141_p11 = scmp.lt.u32.totalorder %s1546_s9, %s1635_s6 }
 0x2de   : > { %p1142_p5 = scmp.lt.u32.totalorder %s1140_s11, %s1136_s17  ;;  %p1144_p10 = scmp.lt.u32.totalorder %s1136_s17, %s1546_s9 }
 0x2df   : > { %p1138_p1 = pnand %p1137_p3, %p1656_p0 }
 0x2e0   : > { %p1143_p7 = por %p1142_p5, %p1141_p11 }
 0x2e1   : > { %p1139_p12 = pneg %p1138_p1 }
 0x2e2   : > { %p1145_p13 = por %p1144_p10, %p1143_p7 }
 0x2e4   : > { %p1146_p2 = pnand %p1145_p13, %p1139_p12 }
 0x2e6   : > { %1149 = shalt.err (!%p1146_p2)
}
 0x2e7   : > { %853 = dma.vmem_to_hbm [thread:$0]  (%p1656_p0), %s1524_s15, 256, %s1546_s9, %s573_s28, %s1226_s12, %s1226_s12, %s1227_s27  }
 0x2e8 PF: > { %s619_s24 = sand.u32 1, %s1196_s21   ;;  %p1657_p8 = scmp.ne.s32.totalorder %s1652_s30, 0 }
 0x2e9   : > { %p1658_p9 = scmp.ge.s32.totalorder %s1216_s26, 2  ;;  %s620_s29 = scalar_lea.sflag [#allocation4], %s619_s24 }
 0x2eb   : > { %p874_p4 = pnand %p1658_p9, %p1657_p8 }
 0x2ed   : > { %1187 = dma.done.wait (!%p874_p4), %s620_s29, 256  }
 0x2ee   : > { %1189 = vsyncadd (!%p874_p4), %s620_s29, 4294967040  ;;  %s629_s19 = scalar_lea.sflag [#allocation13], %s619_s24 }
 0x2ef   : > { %1191 = dma.done.wait (!%p874_p4), %s629_s19, 256  }
 0x2f0   : > { %1193 = vsyncadd (!%p874_p4), %s629_s19, 4294967040  ;;  %s28_s26 = sadd.s32 1, %s1216_s26   ;;  %s1659_s21 = smov %s1200_s22 }
 0x2f1   : > { %p25_p6 = scmp.ge.s32.totalorder %s28_s26, 4   ;;  %s1660_s22 = smov %s1204_s23 }
 0x2f2   : > { %s1661_s23 = smov %s1439_s20  ;;  %s1662_s24 = smov %s1212_s25 }
 0x2f3   : > { %s1663_s25 = smov %s1665_s18  ;;  %27 = sbr.rel (!%p25_p6) target bundleno = 12 (0xc), region = 118 }
 0x2fa   :  { %634 = vsyncpa [#allocation3], 1 }
 0x2fb   :  { %636 = vsyncpa [#allocation3 + $0x1], 1 }
 0x2fc   :  { %637 = vsyncpa [#allocation6], 1 }
 0x2fd   :  { %638 = vsyncpa [#allocation9], 1 }
 0x2fe   :  { %639 = vsyncpa [#allocation4], 1 }
 0x2ff   :  { %641 = vsyncpa [#allocation4 + $0x1], 1 }
 0x300   :  { %642 = vsyncpa [#allocation13], 1 }
 0x301   :  { %644 = vsyncpa [#allocation13 + $0x1], 1 }

</bundles_post_ra>
